<compile_context>
chip_gen: v5e
topology: v5e:2x2
jax: 0.10.0
libtpu: 0.0.40
codegen_flags: <defaults>
</compile_context>

<pallas_src>
import functools

import jax
import jax.numpy as jnp
from jax.experimental import pallas as pl
from jax.experimental.pallas import tpu as pltpu

BN_EPS = 1e-5


# --------------------------------------------------------------------------
# Kernels
# --------------------------------------------------------------------------

def _conv1(x, w1, k):
    """k->64 contraction on the VPU (k broadcast FMAs); no bias (cancels in BN)."""
    h = x[:, 0:1] * w1[0:1, :]
    for i in range(1, k):
        h = h + x[:, i:i + 1] * w1[i:i + 1, :]
    return h


def _row_mask(tile_rows, n_valid):
    """(T,1) bool mask of rows that are real (not padding)."""
    row0 = (pl.program_id(0) * pl.num_programs(2) + pl.program_id(2)) * tile_rows
    rows = row0 + jax.lax.broadcasted_iota(jnp.int32, (tile_rows, 1), 0)
    return rows < n_valid


def conv1_stats_kernel(x_ref, w1_ref, s1_ref, q1_ref, *, k):
    """conv1 (k -> 64) on one row tile, emit only per-batch (sum, sum_sq).

    Padded rows of x are zero and conv1 has no bias, so they contribute 0.
    """
    @pl.when(pl.program_id(2) == 0)
    def _():
        s1_ref[...] = jnp.zeros_like(s1_ref)
        q1_ref[...] = jnp.zeros_like(q1_ref)

    h = _conv1(x_ref[0], w1_ref[...], k)                     # (T, 64) f32
    s1_ref[0] += jnp.sum(h, axis=0, keepdims=True)
    q1_ref[0] += jnp.sum(h * h, axis=0, keepdims=True)


def conv2_stats_kernel(x_ref, w1_ref, scale1_ref, shift1_ref, w2_ref,
                       s2_ref, q2_ref, *, k, n_valid, need_mask):
    """Recompute conv1, apply bn1-affine+ReLU, conv2 (64->128); emit bn2 stats."""
    @pl.when(pl.program_id(2) == 0)
    def _():
        s2_ref[...] = jnp.zeros_like(s2_ref)
        q2_ref[...] = jnp.zeros_like(q2_ref)

    x = x_ref[0]                                             # (T, k) f32
    h1 = _conv1(x, w1_ref[...], k)
    a1 = jnp.maximum(h1 * scale1_ref[...] + shift1_ref[...], 0.0)     # (T, 64)
    h2 = jnp.dot(a1.astype(jnp.bfloat16), w2_ref[...],
                 preferred_element_type=jnp.float32)                  # (T, 128)
    if need_mask:
        valid = _row_mask(x.shape[0], n_valid)
        h2 = jnp.where(valid, h2, 0.0)
    s2_ref[0] += jnp.sum(h2, axis=0, keepdims=True)
    q2_ref[0] += jnp.sum(h2 * h2, axis=0, keepdims=True)


def conv3_pool_kernel(x_ref, w1_ref, scale1_ref, shift1_ref,
                      w2_ref, scale2_ref, shift2_ref, w3_ref,
                      s3_ref, q3_ref, mx_ref, mn_ref, *, k, n_valid, need_mask):
    """Recompute conv1/conv2, bn2-affine+ReLU, conv3 (128->1024); emit bn3
    stats plus running per-batch max AND min of the pre-BN conv3 values.

    The (T,1024) conv3 output lives only in VMEM for this tile; since
    BN-affine+ReLU is monotone per channel, max(relu(a*h+b)) is
    relu(a*max(h)+b) when a>=0 else relu(a*min(h)+b), reconstructed later.
    """
    @pl.when(pl.program_id(2) == 0)
    def _():
        s3_ref[...] = jnp.zeros_like(s3_ref)
        q3_ref[...] = jnp.zeros_like(q3_ref)
        mx_ref[...] = jnp.full(mx_ref.shape, -jnp.inf, mx_ref.dtype)
        mn_ref[...] = jnp.full(mn_ref.shape, jnp.inf, mn_ref.dtype)

    x = x_ref[0]
    h1 = _conv1(x, w1_ref[...], k)
    a1 = jnp.maximum(h1 * scale1_ref[...] + shift1_ref[...], 0.0)       # (T, 64)
    h2 = jnp.dot(a1.astype(jnp.bfloat16), w2_ref[...],
                 preferred_element_type=jnp.float32)                    # (T, 128)
    a2 = jnp.maximum(h2 * scale2_ref[...] + shift2_ref[...], 0.0)
    h3 = jnp.dot(a2.astype(jnp.bfloat16), w3_ref[...],
                 preferred_element_type=jnp.float32)                    # (T, 1024)

    if need_mask:
        valid = _row_mask(x.shape[0], n_valid)
        h3s = jnp.where(valid, h3, 0.0)
        h3mx = jnp.where(valid, h3, -jnp.inf)
        h3mn = jnp.where(valid, h3, jnp.inf)
    else:
        h3s = h3
        h3mx = h3
        h3mn = h3

    s3_ref[0] += jnp.sum(h3s, axis=0, keepdims=True)
    q3_ref[0] += jnp.sum(h3s * h3s, axis=0, keepdims=True)
    mx_ref[0] = jnp.maximum(mx_ref[0], jnp.max(h3mx, axis=0, keepdims=True))
    mn_ref[0] = jnp.minimum(mn_ref[0], jnp.min(h3mn, axis=0, keepdims=True))


def fc_head_kernel(mx_ref, mn_ref, scale3_ref, shift3_ref,
                   w4_ref, g4_ref, bt4_ref,
                   w5_ref, g5_ref, bt5_ref,
                   w6_ref, b6_ref, out_ref):
    """Finish the max-pool, then fc1+bn4+relu, fc2+bn5+relu, fc3 on (B, 1024)."""
    scale3 = scale3_ref[...]                                  # (1, 1024)
    shift3 = shift3_ref[...]
    # max over points of relu(scale*h + shift): affine + relu are monotone
    # per channel, so pick max(h) or min(h) depending on sign of scale.
    hsel = jnp.where(scale3 >= 0.0, mx_ref[...], mn_ref[...])          # (B, 1024)
    pooled = jnp.maximum(hsel * scale3 + shift3, 0.0)

    def bn_relu(h, g, bt):
        n = h.shape[0]
        mean = jnp.sum(h, axis=0, keepdims=True) * (1.0 / n)
        ex2 = jnp.sum(h * h, axis=0, keepdims=True) * (1.0 / n)
        var = jnp.maximum(ex2 - mean * mean, 0.0)
        y = (h - mean) * jax.lax.rsqrt(var + BN_EPS) * g + bt
        return jnp.maximum(y, 0.0)

    f = jnp.dot(pooled.astype(jnp.bfloat16), w4_ref[...],
                preferred_element_type=jnp.float32)                    # (B, 512)
    f = bn_relu(f, g4_ref[...], bt4_ref[...])
    f = jnp.dot(f.astype(jnp.bfloat16), w5_ref[...],
                preferred_element_type=jnp.float32)                    # (B, 256)
    f = bn_relu(f, g5_ref[...], bt5_ref[...])
    out_ref[...] = jnp.dot(f.astype(jnp.bfloat16), w6_ref[...],
                           preferred_element_type=jnp.float32) + b6_ref[...]


# --------------------------------------------------------------------------
# Wrapper
# --------------------------------------------------------------------------

def _round_up(x, m):
    return ((x + m - 1) // m) * m


def _bn_scale_shift(ssum, ssq, count, gamma, beta):
    """Fold partial per-batch (sum, sum_sq) into per-channel scale/shift (f32)."""
    mean = jnp.sum(ssum[:, 0, :], axis=0) / count                 # (C,)
    ex2 = jnp.sum(ssq[:, 0, :], axis=0) / count
    var = jnp.maximum(ex2 - mean * mean, 0.0)                     # biased var
    scale = gamma * jax.lax.rsqrt(var + BN_EPS)                   # (1, C)
    shift = beta - mean * scale
    return scale, shift


def init_tnet_params(key, k=3):
    """Deterministic synthetic parameters matching the PyTorch module shapes."""
    dims = [
        ("conv1", k, 64), ("conv2", 64, 128), ("conv3", 128, 1024),
        ("fc1", 1024, 512), ("fc2", 512, 256), ("fc3", 256, k * k),
    ]
    params = {}
    keys = jax.random.split(key, 2 * len(dims))
    for i, (name, cin, cout) in enumerate(dims):
        kw, kb = keys[2 * i], keys[2 * i + 1]
        # stored already transposed: (cin, cout), so kernels do x @ W
        params[name + "_w"] = (
            jax.random.normal(kw, (cin, cout), jnp.float32) * (1.0 / jnp.sqrt(cin))
        )
        params[name + "_b"] = jax.random.normal(kb, (1, cout), jnp.float32) * 0.05
    bn_dims = [64, 128, 1024, 512, 256]
    bnkeys = jax.random.split(jax.random.fold_in(key, 123), 2 * len(bn_dims))
    for i, c in enumerate(bn_dims):
        params[f"bn{i+1}_g"] = 1.0 + 0.1 * jax.random.normal(bnkeys[2 * i], (1, c), jnp.float32)
        params[f"bn{i+1}_b"] = 0.1 * jax.random.normal(bnkeys[2 * i + 1], (1, c), jnp.float32)
    return params


def tnet_forward(x, params, k=3, row_tile=1024):
    """x: (B, k, N) float32 (PyTorch NCW). Returns (B, k, k)."""
    B, kk, N = x.shape
    assert kk == k
    x_bnk = jnp.transpose(x, (0, 2, 1)).astype(jnp.float32)       # (B, N, k)

    # ---- row tiling: pad N to a tile multiple; when B==1 split the row axis
    # into an outer 'parallel' part so both v7x TensorCores get work.
    T = max(8, _round_up(min(row_tile, N), 8))
    n_tiles = -(-N // T)
    n_outer = 2 if (B == 1 and n_tiles >= 2) else 1
    n_inner = -(-n_tiles // n_outer)
    N_pad = n_outer * n_inner * T
    need_mask = (N_pad != N)
    if need_mask:
        x_bnk = jnp.pad(x_bnk, ((0, 0), (0, N_pad - N), (0, 0)))

    grid = (n_outer, B, n_inner)
    count = float(B * N)

    # 48 MiB keeps headroom on v7x (64 MiB physical); raise on v5e/v6e if
    # larger row tiles are desired.
    stream_params = pltpu.CompilerParams(
        dimension_semantics=("parallel", "parallel", "arbitrary"),
        vmem_limit_bytes=48 << 20,
    )

    x_spec = pl.BlockSpec((1, T, k), lambda o, b, t: (b, o * n_inner + t, 0))

    def accspec(c):
        # per-(outer, batch) accumulator, resident across the inner row axis
        return pl.BlockSpec((1, 1, c), lambda o, b, t: (o * B + b, 0, 0))

    def fullspec(shape):
        nd = len(shape)
        return pl.BlockSpec(shape, lambda o, b, t, _nd=nd: (0,) * _nd)

    def accshape(c):
        return jax.ShapeDtypeStruct((n_outer * B, 1, c), jnp.float32)

    w1 = params["conv1_w"]                                    # (k, 64) f32
    w2 = params["conv2_w"].astype(jnp.bfloat16)               # (64, 128)
    w3 = params["conv3_w"].astype(jnp.bfloat16)               # (128, 1024)

    # ---- stage 1: conv1 -> bn1 stats only (streamed, no activation output) ----
    s1, q1 = pl.pallas_call(
        functools.partial(conv1_stats_kernel, k=k),
        grid=grid,
        in_specs=[x_spec, fullspec((k, 64))],
        out_specs=(accspec(64), accspec(64)),
        out_shape=(accshape(64), accshape(64)),
        compiler_params=stream_params,
    )(x_bnk, w1)
    scale1, shift1 = _bn_scale_shift(s1, q1, count, params["bn1_g"], params["bn1_b"])

    # ---- stage 2: recompute conv1, bn1+relu, conv2 -> bn2 stats only ----------
    s2, q2 = pl.pallas_call(
        functools.partial(conv2_stats_kernel, k=k, n_valid=N, need_mask=need_mask),
        grid=grid,
        in_specs=[x_spec, fullspec((k, 64)), fullspec((1, 64)), fullspec((1, 64)),
                  fullspec((64, 128))],
        out_specs=(accspec(128), accspec(128)),
        out_shape=(accshape(128), accshape(128)),
        compiler_params=stream_params,
    )(x_bnk, w1, scale1, shift1, w2)
    scale2, shift2 = _bn_scale_shift(s2, q2, count, params["bn2_g"], params["bn2_b"])

    # ---- stage 3: recompute conv1/conv2, bn2+relu, conv3 -> bn3 stats + pool --
    s3, q3, mx, mn = pl.pallas_call(
        functools.partial(conv3_pool_kernel, k=k, n_valid=N, need_mask=need_mask),
        grid=grid,
        in_specs=[x_spec, fullspec((k, 64)), fullspec((1, 64)), fullspec((1, 64)),
                  fullspec((64, 128)), fullspec((1, 128)), fullspec((1, 128)),
                  fullspec((128, 1024))],
        out_specs=(accspec(1024), accspec(1024), accspec(1024), accspec(1024)),
        out_shape=(accshape(1024), accshape(1024), accshape(1024), accshape(1024)),
        compiler_params=stream_params,
    )(x_bnk, w1, scale1, shift1, w2, scale2, shift2, w3)
    scale3, shift3 = _bn_scale_shift(s3, q3, count, params["bn3_g"], params["bn3_b"])

    mx_b = jnp.max(mx.reshape(n_outer, B, 1024), axis=0)      # (B, 1024)
    mn_b = jnp.min(mn.reshape(n_outer, B, 1024), axis=0)

    # ---- stage 4: FC head (gridless, tiny) ------------------------------------
    vmem = pltpu.MemorySpace.VMEM
    head_args = (
        mx_b, mn_b, scale3, shift3,
        params["fc1_w"].astype(jnp.bfloat16), params["bn4_g"], params["bn4_b"],
        params["fc2_w"].astype(jnp.bfloat16), params["bn5_g"], params["bn5_b"],
        params["fc3_w"].astype(jnp.bfloat16), params["fc3_b"],
    )
    out_flat = pl.pallas_call(
        fc_head_kernel,
        out_shape=jax.ShapeDtypeStruct((B, k * k), jnp.float32),
        in_specs=[pl.BlockSpec(memory_space=vmem)] * len(head_args),
        out_specs=pl.BlockSpec(memory_space=vmem),
        compiler_params=pltpu.CompilerParams(vmem_limit_bytes=48 << 20),
    )(*head_args)

    # + identity (computed in the wrapper, not in the kernel epilogue)
    eye_flat = jnp.eye(k, dtype=jnp.float32).reshape(1, k * k)
    return (out_flat + eye_flat).reshape(B, k, k)


# --------------------------------------------------------------------------
# Pure-JAX reference (training-mode BN, same bf16 matmul precision)
# --------------------------------------------------------------------------

def tnet_reference(x, params, k=3):
    B, _, N = x.shape
    xt = jnp.transpose(x, (0, 2, 1)).reshape(B * N, k).astype(jnp.float32)

    def bn_train(h, g, b):
        mean = jnp.mean(h, axis=0, keepdims=True)
        var = jnp.mean((h - mean) ** 2, axis=0, keepdims=True)    # biased
        return (h - mean) * jax.lax.rsqrt(var + BN_EPS) * g + b

    def mm(a, w):
        return jnp.dot(a.astype(jnp.bfloat16), w.astype(jnp.bfloat16),
                       preferred_element_type=jnp.float32)

    h = xt @ params["conv1_w"] + params["conv1_b"]
    h = jnp.maximum(bn_train(h, params["bn1_g"], params["bn1_b"]), 0.0)
    h = mm(h, params["conv2_w"]) + params["conv2_b"]
    h = jnp.maximum(bn_train(h, params["bn2_g"], params["bn2_b"]), 0.0)
    h = mm(h, params["conv3_w"]) + params["conv3_b"]
    h = jnp.maximum(bn_train(h, params["bn3_g"], params["bn3_b"]), 0.0)
    pooled = jnp.max(h.reshape(B, N, 1024), axis=1)               # (B, 1024)
    f = mm(pooled, params["fc1_w"]) + params["fc1_b"]
    f = jnp.maximum(bn_train(f, params["bn4_g"], params["bn4_b"]), 0.0)
    f = mm(f, params["fc2_w"]) + params["fc2_b"]
    f = jnp.maximum(bn_train(f, params["bn5_g"], params["bn5_b"]), 0.0)
    out = mm(f, params["fc3_w"]) + params["fc3_b"]
    return out.reshape(B, k, k) + jnp.eye(k, dtype=jnp.float32)[None]


if __name__ == "__main__":
    key = jax.random.PRNGKey(0)
    kx1, kx2, kp = jax.random.split(key, 3)
    K = 3
    params = init_tnet_params(kp, k=K)

    # Case 1: B=2, N=20 with row_tile=8 -> multiple row tiles + padding/masking.
    x1 = jax.random.normal(kx1, (2, K, 20), jnp.float32)
    out1 = jax.block_until_ready(tnet_forward(x1, params, k=K, row_tile=8))
    ref1 = jax.block_until_ready(tnet_reference(x1, params, k=K))
    assert out1.shape == (2, K, K), out1.shape
    err1 = float(jnp.max(jnp.abs(out1 - ref1)))
    assert err1 < 3e-2, f"case1 max abs err {err1}"

    # Case 2: B=1, N=16 with row_tile=8 -> outer 'parallel' row split (v7x path).
    x2 = jax.random.normal(kx2, (1, K, 16), jnp.float32)
    out2 = jax.block_until_ready(tnet_forward(x2, params, k=K, row_tile=8))
    ref2 = jax.block_until_ready(tnet_reference(x2, params, k=K))
    assert out2.shape == (1, K, K), out2.shape
    err2 = float(jnp.max(jnp.abs(out2 - ref2)))
    assert err2 < 3e-2, f"case2 max abs err {err2}"

    print("KERNEL_OK")
</pallas_src>

<mosaic_0001>
module attributes {stable_mosaic.version = 11 : i64} {
  func.func @conv1_stats_kernel(%arg0: i32, %arg1: i32, %arg2: i32, %arg3: memref<1x8x3xf32, #tpu.memory_space<vmem>>, %arg4: memref<3x64xf32, #tpu.memory_space<vmem>>, %arg5: memref<1x1x64xf32, #tpu.memory_space<vmem>>, %arg6: memref<1x1x64xf32, #tpu.memory_space<vmem>>) attributes {dimension_semantics = [#tpu.dimension_semantics<parallel>, #tpu.dimension_semantics<parallel>, #tpu.dimension_semantics<arbitrary>], iteration_bounds = array<i64: 1, 2, 3>, scalar_prefetch = 0 : i64, scratch_operands = 0 : i64, tpu.core_type = #tpu.core_type<tc>, window_params = [{transform_indices = @transform_0, window_bounds = array<i64: 1, 8, 3>}, {pipeline_mode = #tpu.pipeline_mode<synchronous>, transform_indices = @transform_1, window_bounds = array<i64: 3, 64>}, {transform_indices = @transform_2, window_bounds = array<i64: 1, 1, 64>}, {transform_indices = @transform_3, window_bounds = array<i64: 1, 1, 64>}]} {
    %c0_i32 = arith.constant 0 : i32
    %0 = arith.cmpi eq, %arg2, %c0_i32 : i32
    %1 = arith.extui %0 : i1 to i32
    %c0_i32_0 = arith.constant 0 : i32
    %2 = arith.cmpi ne, %1, %c0_i32_0 : i32
    scf.if %2 {
      %cst_18 = arith.constant 0.000000e+00 : f32
      %40 = vector.broadcast %cst_18 : f32 to vector<1x1x64xf32>
      %c0_19 = arith.constant 0 : index
      %c0_20 = arith.constant 0 : index
      %c0_21 = arith.constant 0 : index
      %41 = vector.load %arg5[%c0_19, %c0_20, %c0_21] : memref<1x1x64xf32, #tpu.memory_space<vmem>>, vector<1x1x64xf32>
      tpu.vector_store %arg5[%c0_19, %c0_20, %c0_21], %40 {strides = array<i32>} : memref<1x1x64xf32, #tpu.memory_space<vmem>>, vector<1x1x64xf32>,
      %cst_22 = arith.constant 0.000000e+00 : f32
      %42 = vector.broadcast %cst_22 : f32 to vector<1x1x64xf32>
      %c0_23 = arith.constant 0 : index
      %c0_24 = arith.constant 0 : index
      %c0_25 = arith.constant 0 : index
      %43 = vector.load %arg6[%c0_23, %c0_24, %c0_25] : memref<1x1x64xf32, #tpu.memory_space<vmem>>, vector<1x1x64xf32>
      tpu.vector_store %arg6[%c0_23, %c0_24, %c0_25], %42 {strides = array<i32>} : memref<1x1x64xf32, #tpu.memory_space<vmem>>, vector<1x1x64xf32>,
    } else {
    }
    %c0 = arith.constant 0 : index
    %c0_1 = arith.constant 0 : index
    %c0_2 = arith.constant 0 : index
    %3 = vector.load %arg3[%c0, %c0_1, %c0_2] : memref<1x8x3xf32, #tpu.memory_space<vmem>>, vector<1x8x3xf32>
    %4 = vector.shape_cast %3 : vector<1x8x3xf32> to vector<8x3xf32>
    %c0_3 = arith.constant 0 : index
    %c0_4 = arith.constant 0 : index
    %5 = vector.load %arg4[%c0_3, %c0_4] : memref<3x64xf32, #tpu.memory_space<vmem>>, vector<3x64xf32>
    %6 = vector.extract_strided_slice %4 {offsets = [0, 0], sizes = [8, 1], strides = [1, 1]} : vector<8x3xf32> to vector<8x1xf32>
    %7 = vector.extract_strided_slice %5 {offsets = [0, 0], sizes = [1, 64], strides = [1, 1]} : vector<3x64xf32> to vector<1x64xf32>
    %8 = vector.broadcast %6 : vector<8x1xf32> to vector<8x64xf32>
    %9 = vector.broadcast %7 : vector<1x64xf32> to vector<8x64xf32>
    %10 = arith.mulf %8, %9 : vector<8x64xf32>
    %11 = vector.extract_strided_slice %4 {offsets = [0, 1], sizes = [8, 1], strides = [1, 1]} : vector<8x3xf32> to vector<8x1xf32>
    %12 = vector.extract_strided_slice %5 {offsets = [1, 0], sizes = [1, 64], strides = [1, 1]} : vector<3x64xf32> to vector<1x64xf32>
    %13 = vector.broadcast %11 : vector<8x1xf32> to vector<8x64xf32>
    %14 = vector.broadcast %12 : vector<1x64xf32> to vector<8x64xf32>
    %15 = arith.mulf %13, %14 : vector<8x64xf32>
    %16 = arith.addf %10, %15 : vector<8x64xf32>
    %17 = vector.extract_strided_slice %4 {offsets = [0, 2], sizes = [8, 1], strides = [1, 1]} : vector<8x3xf32> to vector<8x1xf32>
    %18 = vector.extract_strided_slice %5 {offsets = [2, 0], sizes = [1, 64], strides = [1, 1]} : vector<3x64xf32> to vector<1x64xf32>
    %19 = vector.broadcast %17 : vector<8x1xf32> to vector<8x64xf32>
    %20 = vector.broadcast %18 : vector<1x64xf32> to vector<8x64xf32>
    %21 = arith.mulf %19, %20 : vector<8x64xf32>
    %22 = arith.addf %16, %21 : vector<8x64xf32>
    %c0_5 = arith.constant 0 : index
    %c0_6 = arith.constant 0 : index
    %c0_7 = arith.constant 0 : index
    %23 = vector.load %arg5[%c0_5, %c0_6, %c0_7] : memref<1x1x64xf32, #tpu.memory_space<vmem>>, vector<1x1x64xf32>
    %24 = vector.shape_cast %23 : vector<1x1x64xf32> to vector<1x64xf32>
    %cst = arith.constant dense<0.000000e+00> : vector<64xf32>
    %25 = vector.multi_reduction <add>, %22, %cst [0] : vector<8x64xf32> to vector<64xf32>
    %26 = vector.shape_cast %25 : vector<64xf32> to vector<1x64xf32>
    %27 = arith.addf %24, %26 : vector<1x64xf32>
    %c0_8 = arith.constant 0 : index
    %c0_9 = arith.constant 0 : index
    %c0_10 = arith.constant 0 : index
    %28 = vector.load %arg5[%c0_8, %c0_9, %c0_10] : memref<1x1x64xf32, #tpu.memory_space<vmem>>, vector<1x1x64xf32>
    %29 = vector.shape_cast %28 : vector<1x1x64xf32> to vector<1x64xf32>
    %30 = vector.shape_cast %27 : vector<1x64xf32> to vector<1x1x64xf32>
    tpu.vector_store %arg5[%c0_8, %c0_9, %c0_10], %30 {strides = array<i32>} : memref<1x1x64xf32, #tpu.memory_space<vmem>>, vector<1x1x64xf32>,
    %c0_11 = arith.constant 0 : index
    %c0_12 = arith.constant 0 : index
    %c0_13 = arith.constant 0 : index
    %31 = vector.load %arg6[%c0_11, %c0_12, %c0_13] : memref<1x1x64xf32, #tpu.memory_space<vmem>>, vector<1x1x64xf32>
    %32 = vector.shape_cast %31 : vector<1x1x64xf32> to vector<1x64xf32>
    %33 = arith.mulf %22, %22 : vector<8x64xf32>
    %cst_14 = arith.constant dense<0.000000e+00> : vector<64xf32>
    %34 = vector.multi_reduction <add>, %33, %cst_14 [0] : vector<8x64xf32> to vector<64xf32>
    %35 = vector.shape_cast %34 : vector<64xf32> to vector<1x64xf32>
    %36 = arith.addf %32, %35 : vector<1x64xf32>
    %c0_15 = arith.constant 0 : index
    %c0_16 = arith.constant 0 : index
    %c0_17 = arith.constant 0 : index
    %37 = vector.load %arg6[%c0_15, %c0_16, %c0_17] : memref<1x1x64xf32, #tpu.memory_space<vmem>>, vector<1x1x64xf32>
    %38 = vector.shape_cast %37 : vector<1x1x64xf32> to vector<1x64xf32>
    %39 = vector.shape_cast %36 : vector<1x64xf32> to vector<1x1x64xf32>
    tpu.vector_store %arg6[%c0_15, %c0_16, %c0_17], %39 {strides = array<i32>} : memref<1x1x64xf32, #tpu.memory_space<vmem>>, vector<1x1x64xf32>,
    return
  }
  func.func @transform_0(%arg0: i32, %arg1: i32, %arg2: i32) -> (i32, i32, i32) {
    %c3_i32 = arith.constant 3 : i32
    %0 = arith.muli %arg0, %c3_i32 : i32
    %1 = arith.addi %0, %arg2 : i32
    %c0_i32 = arith.constant 0 : i32
    %c0_i32_0 = arith.constant 0 : i32
    return %arg1, %1, %c0_i32 : i32, i32, i32
  }
  func.func @transform_1(%arg0: i32, %arg1: i32, %arg2: i32) -> (i32, i32) {
    %c0_i32 = arith.constant 0 : i32
    %c0_i32_0 = arith.constant 0 : i32
    %c0_i32_1 = arith.constant 0 : i32
    return %c0_i32, %c0_i32_0 : i32, i32
  }
  func.func @transform_2(%arg0: i32, %arg1: i32, %arg2: i32) -> (i32, i32, i32) {
    %c2_i32 = arith.constant 2 : i32
    %0 = arith.muli %arg0, %c2_i32 : i32
    %1 = arith.addi %0, %arg1 : i32
    %c0_i32 = arith.constant 0 : i32
    %c0_i32_0 = arith.constant 0 : i32
    %c0_i32_1 = arith.constant 0 : i32
    return %1, %c0_i32, %c0_i32_0 : i32, i32, i32
  }
  func.func @transform_3(%arg0: i32, %arg1: i32, %arg2: i32) -> (i32, i32, i32) {
    %c2_i32 = arith.constant 2 : i32
    %0 = arith.muli %arg0, %c2_i32 : i32
    %1 = arith.addi %0, %arg1 : i32
    %c0_i32 = arith.constant 0 : i32
    %c0_i32_0 = arith.constant 0 : i32
    %c0_i32_1 = arith.constant 0 : i32
    return %1, %c0_i32, %c0_i32_0 : i32, i32, i32
  }
}

</mosaic_0001>

<bundles_post_ra>
// kernel: tpu_custom_call.1
= control target key start
LH: loop header
LB: loop body
LE: loop exit
PB: predicated region body
PF: predicated region fallthrough
CT: control target
= control target key end

     0   :  { %9 = vsyncpa [#allocation3], 0  ;;  %s844_s0 = inlined_call_operand.vmem [shape: f32[2,24,3], index: 0, kind: input, shape index: {}]   ;;  %s845_s1 = inlined_call_operand.vmem [shape: f32[3,64], index: 1, kind: input, shape index: {}]   ;;  %s846_s2 = inlined_call_operand.hbm [shape: f32[2,1,64], index: 2, kind: output, shape index: {0}]   ;;  %s847_s3 = inlined_call_operand.hbm [shape: f32[2,1,64], index: 3, kind: output, shape index: {1}]  }
   0x1   :  { %11 = vsyncpa [#allocation3 + $0x1], 0 }
   0x2   :  { %12 = vsyncpa [#allocation5], 0 }
   0x3   :  { %14 = vsyncpa [#allocation5 + $0x1], 0  ;;  %s674_s12 = smov 0   ;;  %s676_s13 = smov 0  }
   0x4   :  { %s678_s14 = smov 0   ;;  %s680_s15 = smov 0  }
   0x5   :  { %s682_s16 = smov 0   ;;  %s684_s17 = smov 0  }
   0x6   :  { %s686_s18 = smov 0   ;;  %s688_s19 = smov 0  }
   0x7 LB: > { %s428_s20 = sadd.s32 4294967295, %s648_s19   ;;  %s429_s21 = sadd.s32 4294967294, %s648_s19   ;;  %s648_s19 = sphi %s688_s19, %s20_s19   ;;  %s644_s18 = sphi %s686_s18, %s856_s18   ;;  %s640_s17 = sphi %s684_s17, %s855_s17   ;;  %s636_s16 = sphi %s682_s16, %s854_s16   ;;  %s632_s15 = sphi %s680_s15, %s853_s15   ;;  %s628_s14 = sphi %s678_s14, %s852_s14   ;;  %s624_s13 = sphi %s676_s13, %s851_s13   ;;  %s620_s12 = sphi %s674_s12, %s850_s12  }
   0x8   : > { %s32_s22 = sadd.s32 1, %s640_s17  ;;  %s35_s23 = sadd.s32 1, %s644_s18 }
   0x9   : > { %p33_p0 = scmp.ge.s32.totalorder %s32_s22, 3  ;;  %p113_p1 = scmp.ne.s32.totalorder %s628_s14, %s624_s13 }
   0xa   : > { %p114_p2 = scmp.eq.s32.totalorder %s428_s20, 5  ;;  %p119_p4 = scmp.ne.s32.totalorder %s624_s13, %s620_s12 }
   0xb   : > { %s858_s22 = smov (%p33_p0, %s32_s22), 0  ;;  %s860_s23 = smov (!%p33_p0, %s35_s23), %s644_s18 }
   0xc   : > { %p723_p3 = por %p114_p2, %p113_p1  ;;  %p37_p5 = scmp.ge.s32.totalorder %s860_s23, 2 }
   0xd   : > { %p120_p6 = scmp.eq.s32.totalorder %s429_s21, 5  ;;  %p432_p7 = scmp.ge.s32.totalorder %s648_s19, 1 }
   0xe   : > { %p186_p8 = scmp.lt.s32.totalorder %s648_s19, 7  ;;  %s862_s23 = smov (%p37_p5, %s860_s23), 0 }
   0xf   : > { %p733_p9 = por %p120_p6, %p119_p4  ;;  %s100_s26 = ssub.s32 %s644_s18, %s862_s23 }
  0x10   : > { %p187_p10 = pnand %p432_p7, %p186_p8  ;;  %s103_s27 = sadd.s32 1, %s628_s14 }
  0x11   : > { %p101_p11 = scmp.eq.s32.totalorder %s100_s26, 0  ;;  %s744_s29 = sand.u32 (!%p187_p10), 1, %s624_s13  }
  0x12   : > { %190 = sbr.rel (%p187_p10) target bundleno = 196 (0xc4), region = 28  ;;  %p220_p12 = scmp.lt.s32.totalorder (!%p187_p10), %s636_s16, 1 }
  0x13   : > { %s741_s28 = scalar_select %p101_p11, %s628_s14, %s103_s27  }
  0x14   : > { %p222_p13 = scmp.lt.s32.totalorder (!%p187_p10), %s632_s15, 2  ;;  %s754_s11 = scalar_lea.vmem (!%p187_p10), [#allocation2], %s744_s29 }
  0x15   : > { %s757_s20 = scalar_lea.vmem (!%p187_p10), [#allocation4], %s744_s29  ;;  %p434_p0 = scmp.ne.s32.totalorder (!%p187_p10), %s632_s15, 0 }
  0x17   : > { %s221_s30 = scalar_select %p220_p12, %s636_s16, 1 }
  0x18   : > { %s223_s5 = scalar_select %p222_p13, %s632_s15, 2 }
  0x19   : > { %s437_s4 = smul.u32 3, %s221_s30 }
  0x1a   : > { %237 = sbr.rel (%p434_p0) target bundleno = 34 (0x22), region = 32 }
  0x1b   : > { %s225_s6 = sadd.s32 %s437_s4, %s223_s5 }
  0x1c   : > { %s433_s7 = sshll.u32 %s225_s6, 3 }
  0x1d   : > { %s227_s10 = scalar_lea.vmem %s844_s0, %s433_s7 }
  0x1f   : > { %vm238_vm0 = vcmask 516096   ;;  %v650_v0 = vmov 0.0  }
  0x20   : > { %239 = vst.msk [vmem:[%s754_s11] sm:$0x1] %vm238_vm0, %v650_v0 }
  0x21   : > { %240 = vst.msk [vmem:[%s757_s20] sm:$0x1] %vm238_vm0, %v650_v0 }
  0x22 PF: > { %v241_v1 = vld [vmem:[%s227_s10] sm:$0xff]  ;;  %v651_v2 = vmov 0   ;;  %v652_v3 = vmov 2   ;;  %v653_v4 = vmov 1   ;;  %vm265_vm1 = vcmask 523264   ;;  %s302_s30 = scalar_lea.hbm %s846_s2, %s636_s16  ;;  %s317_s6 = scalar_lea.hbm %s847_s3, %s636_s16 }
  0x23   : > { %518 = vset.pattern.permute.xlu0 %v651_v2  ;;  %520 = vset.pattern.permute.xlu1 %v652_v3  ;;  %v242_v6 = vld [vmem:[%s845_s1] sm:$0x7]  ;;  %s304_s7 = sshll.u32 %s754_s11, 4  ;;  %s775_s8 = sshll.u32 %s302_s30, 4  ;;  %vm274_vm2 = vcmask 516096   ;;  %s305_s7 = int_to_ptr.vmem [resolvable:$true] %s304_s7  ;;  %s307_s8 = int_to_ptr.hbm [resolvable:$true] %s775_s8 }
  0x24   : > { %245 = vperm.xlu0 %518, %v241_v1   ;;  %258 = vperm.xlu1 %520, %v241_v1   ;;  %v248_v7 = vperm.slane %v242_v6, 0  ;;  %v254_v8 = vperm.slane %v242_v6, 1  ;;  %v261_v9 = vperm.slane %v242_v6, 2  ;;  %s319_s9 = sshll.u32 %s757_s20, 4  ;;  %s779_s10 = sshll.u32 %s317_s6, 4  ;;  %s784_s9 = int_to_ptr.vmem [resolvable:$true] %s319_s9  ;;  %s322_s10 = int_to_ptr.hbm [resolvable:$true] %s779_s10 }
  0x25   : > { %s288_s16 = scalar_lea.sflag [#allocation3], %s744_s29  ;;  %s536_s15 = sshra.s32 %s307_s8, 4  ;;  %s537_s15 = int_to_ptr.hbm [resolvable:$true] %s536_s15 }
  0x26   : > { %s538_s21 = scalar_lea.hbm %s537_s15, 1  ;;  %s542_s30 = scalar_lea.hbm %s846_s2, 2 }
  0x27   : > { %v264_v29 = vld [vmem:[%s754_s11] sm:$0x1]  ;;  %p539_p1 = scmp.ne.s32.totalorder %s537_s15, %s538_s21  ;;  %p543_p5 = scmp.lt.s32.totalorder %s537_s15, %s846_s2 }
  0x28   : > { %v276_v32 = vld [vmem:[%s757_s20] sm:$0x1]  ;;  %p544_p6 = scmp.lt.s32.totalorder %s542_s30, %s538_s21 }
  0x29   : > { %p540_p2 = pnand %p539_p1, %p723_p3 }
  0x2a   : > { %p545_p7 = por %p544_p6, %p543_p5 }
  0x2b   : > { %p541_p4 = pneg %p540_p2 }
  0x2c   : > { %519 = vset.pattern.permute.xlu0 %v653_v4 }
  0x2d   : > { %251 = vperm.xlu0 %519, %v241_v1   ;;  %p546_p8 = pnand %p545_p7, %p541_p4 }
  0x35   : > { %521 = vset.pattern.permute.xlu0 %v652_v3 }
  0x96   : > { %v246_v5 = vpop.permute.xlu0 %245  ;;  %v259_v10 = vpop.permute.xlu1 %258 }
  0x97   : > { %v249_v12 = vmul.f32 %v248_v7, %v246_v5  ;;  %v262_v14 = vmul.f32 %v261_v9, %v259_v10 }
  0x9f   : > { %v252_v11 = vpop.permute.xlu0 %251 }
  0xa0   : > { %v255_v13 = vmul.f32 %v254_v8, %v252_v11 }
  0xa2   : > { %v256_v15 = vadd.f32 %v255_v13, %v249_v12 }
  0xa4   : > { %v263_v16 = vadd.f32 %v262_v14, %v256_v15 }
  0xa6   : > { %v266_v17 = vsel %vm265_vm1, %v263_v16, 0.0  ;;  %v277_v18 = vmul.f32 %v263_v16, %v263_v16 }
  0xa7   : > { %v267_v19 = vrot.slane %v266_v17, 4 }
  0xa8   : > { %v278_v20 = vsel %vm265_vm1, %v277_v18, 0.0 }
  0xa9   : > { %v268_v21 = vadd.f32 %v267_v19, %v266_v17  ;;  %v279_v22 = vrot.slane %v278_v20, 4 }
  0xab   : > { %v269_v23 = vrot.slane %v268_v21, 2  ;;  %v280_v24 = vadd.f32 %v279_v22, %v278_v20 }
  0xad   : > { %v270_v25 = vadd.f32 %v269_v23, %v268_v21  ;;  %v281_v26 = vrot.slane %v280_v24, 2 }
  0xaf   : > { %v271_v27 = vrot.slane %v270_v25, 1  ;;  %v282_v28 = vadd.f32 %v281_v26, %v280_v24 }
  0xb1   : > { %v272_v30 = vadd.f32 %v271_v27, %v270_v25  ;;  %v283_v31 = vrot.slane %v282_v28, 1 }
  0xb3   : > { %v273_v33 = vadd.f32 %v272_v30, %v264_v29  ;;  %v284_v34 = vadd.f32 %v283_v31, %v282_v28 }
  0xb5   : > { %275 = vst.msk [vmem:[%s754_s11] sm:$0x1] %vm274_vm2, %v273_v33  ;;  %v285_v35 = vadd.f32 %v284_v34, %v276_v32 }
  0xb6   : > { %549 = shalt.err (!%p546_p8)
}
  0xb7   : > { %438 = dma.vmem_to_hbm [thread:$0]  (%p723_p3), %s305_s7, 16, %s307_s8, %s288_s16   ;;  %286 = vst.msk [vmem:[%s757_s20] sm:$0x1] %vm274_vm2, %v285_v35 }
  0xb8   : > { %s292_s11 = scalar_lea.sflag [#allocation5], %s744_s29  ;;  %s564_s6 = sshra.s32 %s322_s10, 4  ;;  %s565_s6 = int_to_ptr.hbm [resolvable:$true] %s564_s6 }
  0xb9   : > { %s566_s26 = scalar_lea.hbm %s565_s6, 1  ;;  %s570_s27 = scalar_lea.hbm %s847_s3, 2 }
  0xba   : > { %p567_p10 = scmp.ne.s32.totalorder %s565_s6, %s566_s26  ;;  %p571_p13 = scmp.lt.s32.totalorder %s565_s6, %s847_s3 }
  0xbb   : > { %p572_p0 = scmp.lt.s32.totalorder %s570_s27, %s566_s26 }
  0xbc   : > { %p568_p11 = pnand %p567_p10, %p723_p3 }
  0xbd   : > { %p573_p1 = por %p572_p0, %p571_p13 }
  0xbe   : > { %p569_p12 = pneg %p568_p11 }
  0xc0   : > { %p574_p2 = pnand %p573_p1, %p569_p12 }
  0xc2   : > { %577 = shalt.err (!%p574_p2)
}
  0xc3   : > { %439 = dma.vmem_to_hbm [thread:$0]  (%p723_p3), %s784_s9, 16, %s322_s10, %s292_s11  }
  0xc4 PF: > { %p449_p4 = scmp.ge.s32.totalorder %s648_s19, 2  ;;  %s333_s29 = sand.u32 1, %s620_s12  }
  0xc5   : > { %s334_s20 = scalar_lea.sflag [#allocation3], %s333_s29 }
  0xc6   : > { %p443_p5 = pnand %p449_p4, %p733_p9 }
  0xc8   : > { %p444_p6 = pneg %p443_p5 }
  0xca   : > { %611 = dma.done.wait (%p444_p6), %s334_s20, 16  }
  0xcb   : > { %613 = vsyncadd (%p444_p6), %s334_s20, 4294967280  ;;  %s343_s7 = scalar_lea.sflag [#allocation5], %s333_s29 }
  0xcc   : > { %615 = dma.done.wait (%p444_p6), %s343_s7, 16  }
  0xcd   : > { %617 = vsyncadd (%p444_p6), %s343_s7, 4294967280  ;;  %s20_s19 = sadd.s32 1, %s648_s19   ;;  %s850_s12 = smov %s624_s13 }
  0xce   : > { %p17_p7 = scmp.ge.s32.totalorder %s20_s19, 8   ;;  %s851_s13 = smov %s628_s14 }
  0xcf   : > { %s852_s14 = smov %s741_s28  ;;  %s853_s15 = smov %s640_s17 }
  0xd0   : > { %s854_s16 = smov %s644_s18  ;;  %s855_s17 = smov %s858_s22 }
  0xd1   : > { %s856_s18 = smov %s862_s23  ;;  %19 = sbr.rel (!%p17_p7) target bundleno = 7 (0x7), region = 84 }
  0xd6   :  { %348 = vsyncpa [#allocation3], 1 }
  0xd7   :  { %350 = vsyncpa [#allocation3 + $0x1], 1 }
  0xd8   :  { %351 = vsyncpa [#allocation5], 1 }
  0xd9   :  { %353 = vsyncpa [#allocation5 + $0x1], 1 }

</bundles_post_ra>
